<compile_context>
chip_gen: v5e
topology: v5e:2x2
jax: 0.10.0
libtpu: 0.0.40
codegen_flags: <defaults>
</compile_context>

<pallas_src>
import functools

import jax
import jax.numpy as jnp
from jax.experimental import pallas as pl
from jax.experimental.pallas import tpu as pltpu

_LANE = 128
_SUBLANE = 8
_NEG_INF = -1e30                       # bias padding -> ~0 probability for padded vocab cols
_VMEM_LIMIT = 48 * 1024 * 1024         # explicit scoped-VMEM budget; fits v7x's 64 MiB


def _round_up(x, m):
    return -(-x // m) * m


def _vocab_tiling(vocab_size, max_tile=2048):
    """Vocab tile (multiple of 128, 2048 = multiple of 256 for v6e/v7x MXU) + padded V."""
    v128 = _round_up(vocab_size, _LANE)
    tile_v = min(max_tile, v128)
    v_pad = _round_up(v128, tile_v)
    return tile_v, v_pad


# --------------------------------------------------------------------------------------
# Kernel A: LSTM step + FF1 + pointer-gen head (single block, everything VMEM-resident).
# --------------------------------------------------------------------------------------
def _decoder_state_kernel(emb_ref, h_ref, c_ref, ctx_ref,
                          w_ih_ref, w_hh_ref, b_lstm_ref,
                          w1_h_ref, w1_ctx_ref, b1_ref,
                          wg_ctx_ref, wg_h_ref, wg_c_ref, wg_emb_ref, b_gen_ref,
                          h_out_ref, c_out_ref, ff1_ref, pgen_ref):
    emb = emb_ref[...]          # (B, E)
    h = h_ref[...]              # (B, H)
    c = c_ref[...]              # (B, H)
    ctx = ctx_ref[...]          # (B, 2H)

    # Per-gate weights stacked as (4, in, H): each gate is its own lane-aligned matmul,
    # so no slicing of a 4H lane row (PyTorch gate order i, f, g, o).
    def gate(k):
        return (jnp.dot(emb, w_ih_ref[k], preferred_element_type=jnp.float32)
                + jnp.dot(h, w_hh_ref[k], preferred_element_type=jnp.float32)
                + b_lstm_ref[k])

    i_g = jax.nn.sigmoid(gate(0))
    f_g = jax.nn.sigmoid(gate(1))
    g_g = jnp.tanh(gate(2))
    o_g = jax.nn.sigmoid(gate(3))
    c_new = f_g * c + i_g * g_g
    h_new = o_g * jnp.tanh(c_new)
    h_out_ref[...] = h_new
    c_out_ref[...] = c_new

    # FF1 of cat([h_new, ctx]) expressed as a split matmul (no in-kernel concat).
    ff1_ref[...] = (jnp.dot(h_new, w1_h_ref[...], preferred_element_type=jnp.float32)
                    + jnp.dot(ctx, w1_ctx_ref[...], preferred_element_type=jnp.float32)
                    + b1_ref[...])

    # p_gen = sigmoid(w_gen . [ctx, h_new, c_new, emb] + b) with w_gen pre-split.
    logit = (jnp.sum(ctx * wg_ctx_ref[...], axis=-1, keepdims=True)
             + jnp.sum(h_new * wg_h_ref[...], axis=-1, keepdims=True)
             + jnp.sum(c_new * wg_c_ref[...], axis=-1, keepdims=True)
             + jnp.sum(emb * wg_emb_ref[...], axis=-1, keepdims=True)
             + b_gen_ref[...])
    pgen_ref[...] = jax.nn.sigmoid(logit)


# --------------------------------------------------------------------------------------
# Kernel B: tiled vocab projection + per-tile softmax stats (carry-free -> parallel).
# --------------------------------------------------------------------------------------
def _vocab_logits_kernel(ff1_ref, w2_ref, b2_ref, logits_ref, tmax_ref, tsum_ref):
    # bf16 x bf16 -> f32 hits the native MXU path; w2 is streamed from HBM in bf16.
    ff1 = ff1_ref[...].astype(jnp.bfloat16)
    logits = jnp.dot(ff1, w2_ref[...], preferred_element_type=jnp.float32) + b2_ref[...]
    logits_ref[...] = logits                                   # lane-dense (B, TILE_V) store
    m = jnp.max(logits, axis=1, keepdims=True)                 # (B, 1)
    tmax_ref[0] = m
    tsum_ref[0] = jnp.sum(jnp.exp(logits - m), axis=1, keepdims=True)


# --------------------------------------------------------------------------------------
# Kernel C: normalize p = exp(logit - (m + log l)); exp goes to the EUP, no divide.
# --------------------------------------------------------------------------------------
def _softmax_normalize_kernel(logits_ref, z_ref, p_ref):
    p_ref[...] = jnp.exp(logits_ref[...] - z_ref[...])


def decoder_forward(x_t, decoder_states, context_vector, params, *, vocab_size):
    """Mirrors Decoder.forward.

    Args:
      x_t:             (B, 1) int32 token ids
      decoder_states:  (h, c), each (1, B, H) float32
      context_vector:  (B, 2H) float32
      params:          kernel-layout parameter dict (see init_params)
      vocab_size:      true (unpadded) vocabulary size (static)
    Returns:
      p_vocab (B, V), (h_n, c_n) each (1, B, H), p_gen (B, 1)
    """
    h0, c0 = decoder_states
    B = x_t.shape[0]
    H = h0.shape[-1]
    tile_v, v_pad = _vocab_tiling(vocab_size)
    assert params["w2"].shape == (H, v_pad)
    nt = v_pad // tile_v
    b_pad = _round_up(B, _SUBLANE)        # feed at least 8 sublanes to every vreg / MXU pass

    # TODO(synk): embedding row gather stays in JAX glue (XLA gather); a DMA-gather Pallas
    # kernel is possible but not worth it for B rows per decode step.
    emb = params["embedding"][x_t[:, 0]]            # (B, E)

    def pad_b(x):
        return jnp.pad(x, ((0, b_pad - B), (0, 0)))

    emb_p, h_p, c_p, ctx_p = pad_b(emb), pad_b(h0[0]), pad_b(c0[0]), pad_b(context_vector)

    vmem = pl.BlockSpec(memory_space=pltpu.MemorySpace.VMEM)

    # ---- Kernel A ----
    h_n, c_n, ff1, p_gen = pl.pallas_call(
        _decoder_state_kernel,
        out_shape=(
            jax.ShapeDtypeStruct((b_pad, H), jnp.float32),   # h_n
            jax.ShapeDtypeStruct((b_pad, H), jnp.float32),   # c_n
            jax.ShapeDtypeStruct((b_pad, H), jnp.float32),   # ff1
            jax.ShapeDtypeStruct((b_pad, 1), jnp.float32),   # p_gen
        ),
        in_specs=[vmem] * 15,
        out_specs=(vmem, vmem, vmem, vmem),
        input_output_aliases={1: 0, 2: 1},   # h -> h_n, c -> c_n: recurrent state in place
        compiler_params=pltpu.CompilerParams(vmem_limit_bytes=_VMEM_LIMIT),
    )(emb_p, h_p, c_p, ctx_p,
      params["w_ih"], params["w_hh"], params["b_lstm"],
      params["w1_h"], params["w1_ctx"], params["b1"],
      params["wg_ctx"], params["wg_h"], params["wg_c"], params["wg_emb"],
      params["b_gen"])

    # ---- Kernel B: stream w2 tile-by-tile (bf16, double-buffered) ----
    logits, tile_m, tile_l = pl.pallas_call(
        _vocab_logits_kernel,
        out_shape=(
            jax.ShapeDtypeStruct((b_pad, v_pad), jnp.float32),
            jax.ShapeDtypeStruct((nt, b_pad, 1), jnp.float32),
            jax.ShapeDtypeStruct((nt, b_pad, 1), jnp.float32),
        ),
        grid=(nt,),
        in_specs=[
            pl.BlockSpec((b_pad, H), lambda j: (0, 0)),      # ff1 (resident)
            pl.BlockSpec((H, tile_v), lambda j: (0, j)),     # w2 tile (bf16 stream)
            pl.BlockSpec((1, tile_v), lambda j: (0, j)),     # b2 tile
        ],
        out_specs=(
            pl.BlockSpec((b_pad, tile_v), lambda j: (0, j)),
            pl.BlockSpec((1, b_pad, 1), lambda j: (j, 0, 0)),
            pl.BlockSpec((1, b_pad, 1), lambda j: (j, 0, 0)),
        ),
        compiler_params=pltpu.CompilerParams(
            dimension_semantics=("parallel",),               # carry-free -> both TCs on v7x
            vmem_limit_bytes=_VMEM_LIMIT),
    )(ff1, params["w2"], params["b2"])

    # ---- tiny carry-free combine of per-tile stats (O(B * num_tiles) JAX glue) ----
    tm = tile_m[:, :, 0]                                     # (nt, B)
    tl = tile_l[:, :, 0]
    m = jnp.max(tm, axis=0)                                  # (B,)
    l = jnp.sum(tl * jnp.exp(tm - m[None, :]), axis=0)       # (B,)
    z = (m + jnp.log(l))[:, None]                            # (B, 1)

    # ---- Kernel C: normalize in place over the logits buffer ----
    p_vocab_pad = pl.pallas_call(
        _softmax_normalize_kernel,
        out_shape=jax.ShapeDtypeStruct((b_pad, v_pad), jnp.float32),
        grid=(nt,),
        in_specs=[
            pl.BlockSpec((b_pad, tile_v), lambda j: (0, j)),
            pl.BlockSpec((b_pad, 1), lambda j: (0, 0)),
        ],
        out_specs=pl.BlockSpec((b_pad, tile_v), lambda j: (0, j)),
        input_output_aliases={0: 0},
        compiler_params=pltpu.CompilerParams(
            dimension_semantics=("parallel",),
            vmem_limit_bytes=_VMEM_LIMIT),
    )(logits, z)

    p_vocab = p_vocab_pad[:B, :vocab_size]
    return p_vocab, (h_n[:B][None], c_n[:B][None]), p_gen[:B]


def init_params(key, vocab_size, embed_size, hidden_size):
    """Parameters already laid out for the TPU kernels.

    Vs. the PyTorch module: weights stored transposed (in, out); LSTM weights stacked
    per gate (4, in, H) in (i, f, g, o) order with bias_ih + bias_hh pre-summed; W1 split
    into h / context parts; w_gen split into [ctx | h | c | emb]; W2 stored in bf16 and
    padded to a multiple of the vocab tile with -1e30 padded bias columns.
    """
    H, E, V = hidden_size, embed_size, vocab_size
    _, v_pad = _vocab_tiling(V)
    ks = jax.random.split(key, 10)
    s = 0.1
    w1 = s * jax.random.normal(ks[4], (3 * H, H), jnp.float32)
    w_gen = s * jax.random.normal(ks[8], (4 * H + E,), jnp.float32)
    w2 = (s * jax.random.normal(ks[6], (H, V), jnp.float32)).astype(jnp.bfloat16)
    b2 = s * jax.random.normal(ks[7], (1, V), jnp.float32)
    return {
        "embedding": s * jax.random.normal(ks[0], (V, E), jnp.float32),
        "w_ih": s * jax.random.normal(ks[1], (4, E, H), jnp.float32),
        "w_hh": s * jax.random.normal(ks[2], (4, H, H), jnp.float32),
        "b_lstm": s * jax.random.normal(ks[3], (4, 1, H), jnp.float32),
        "w1_h": w1[:H, :],
        "w1_ctx": w1[H:, :],
        "b1": s * jax.random.normal(ks[5], (1, H), jnp.float32),
        "w2": jnp.pad(w2, ((0, 0), (0, v_pad - V))),
        "b2": jnp.pad(b2, ((0, 0), (0, v_pad - V)), constant_values=_NEG_INF),
        "wg_ctx": w_gen[None, :2 * H],
        "wg_h": w_gen[None, 2 * H:3 * H],
        "wg_c": w_gen[None, 3 * H:4 * H],
        "wg_emb": w_gen[None, 4 * H:],
        "b_gen": s * jax.random.normal(ks[9], (1, 1), jnp.float32),
    }


def reference_forward(x_t, decoder_states, context_vector, params, *, vocab_size):
    """Pure-JAX reference mirroring the PyTorch semantics (and the bf16 w2 policy)."""
    h0, c0 = decoder_states
    emb = params["embedding"][x_t[:, 0]]
    h, c = h0[0], c0[0]
    w_ih, w_hh, b = params["w_ih"], params["w_hh"], params["b_lstm"]
    g = [emb @ w_ih[k] + h @ w_hh[k] + b[k] for k in range(4)]
    i_g, f_g = jax.nn.sigmoid(g[0]), jax.nn.sigmoid(g[1])
    g_g, o_g = jnp.tanh(g[2]), jax.nn.sigmoid(g[3])
    c_n = f_g * c + i_g * g_g
    h_n = o_g * jnp.tanh(c_n)
    ff1 = h_n @ params["w1_h"] + context_vector @ params["w1_ctx"] + params["b1"]
    logits = (jnp.dot(ff1.astype(jnp.bfloat16), params["w2"][:, :vocab_size],
                      preferred_element_type=jnp.float32) + params["b2"][:, :vocab_size])
    p_vocab = jax.nn.softmax(logits, axis=1)
    logit_g = (jnp.sum(context_vector * params["wg_ctx"], -1, keepdims=True)
               + jnp.sum(h_n * params["wg_h"], -1, keepdims=True)
               + jnp.sum(c_n * params["wg_c"], -1, keepdims=True)
               + jnp.sum(emb * params["wg_emb"], -1, keepdims=True)
               + params["b_gen"])
    p_gen = jax.nn.sigmoid(logit_g)
    return p_vocab, (h_n[None], c_n[None]), p_gen


if __name__ == "__main__":
    B, V, E, H = 2, 32, 16, 32  # batch, vocab, embed, hidden

    key = jax.random.PRNGKey(0)
    k_p, k_x, k_h, k_c, k_ctx = jax.random.split(key, 5)
    params = init_params(k_p, V, E, H)

    x_t = jax.random.randint(k_x, (B, 1), 0, V, dtype=jnp.int32)
    h0 = 0.1 * jax.random.normal(k_h, (1, B, H), jnp.float32)
    c0 = 0.1 * jax.random.normal(k_c, (1, B, H), jnp.float32)
    ctx = 0.1 * jax.random.normal(k_ctx, (B, 2 * H), jnp.float32)

    fwd = jax.jit(functools.partial(decoder_forward, vocab_size=V))
    p_vocab, (h_n, c_n), p_gen = fwd(x_t, (h0, c0), ctx, params)
    jax.block_until_ready((p_vocab, h_n, c_n, p_gen))

    r_pv, (r_h, r_c), r_pg = reference_forward(x_t, (h0, c0), ctx, params, vocab_size=V)

    assert p_vocab.shape == (B, V)
    assert h_n.shape == (1, B, H) and c_n.shape == (1, B, H)
    assert p_gen.shape == (B, 1)
    assert jnp.allclose(jnp.sum(p_vocab, axis=1), 1.0, atol=1e-3)
    assert jnp.allclose(p_vocab, r_pv, atol=1e-3, rtol=1e-3)
    assert jnp.allclose(h_n, r_h, atol=1e-3, rtol=1e-3)
    assert jnp.allclose(c_n, r_c, atol=1e-3, rtol=1e-3)
    assert jnp.allclose(p_gen, r_pg, atol=1e-3, rtol=1e-3)

    print("KERNEL_OK")
</pallas_src>

<mosaic_0001>
module attributes {stable_mosaic.version = 11 : i64} {
  func.func @_decoder_state_kernel(%arg0: memref<8x16xf32, #tpu.memory_space<vmem>>, %arg1: memref<8x32xf32, #tpu.memory_space<vmem>>, %arg2: memref<8x32xf32, #tpu.memory_space<vmem>>, %arg3: memref<8x64xf32, #tpu.memory_space<vmem>>, %arg4: memref<4x16x32xf32, #tpu.memory_space<vmem>>, %arg5: memref<4x32x32xf32, #tpu.memory_space<vmem>>, %arg6: memref<4x1x32xf32, #tpu.memory_space<vmem>>, %arg7: memref<32x32xf32, #tpu.memory_space<vmem>>, %arg8: memref<64x32xf32, #tpu.memory_space<vmem>>, %arg9: memref<1x32xf32, #tpu.memory_space<vmem>>, %arg10: memref<1x64xf32, #tpu.memory_space<vmem>>, %arg11: memref<1x32xf32, #tpu.memory_space<vmem>>, %arg12: memref<1x32xf32, #tpu.memory_space<vmem>>, %arg13: memref<1x16xf32, #tpu.memory_space<vmem>>, %arg14: memref<1x1xf32, #tpu.memory_space<vmem>>, %arg15: memref<8x32xf32, #tpu.memory_space<vmem>>, %arg16: memref<8x32xf32, #tpu.memory_space<vmem>>, %arg17: memref<8x32xf32, #tpu.memory_space<vmem>>, %arg18: memref<8x1xf32, #tpu.memory_space<vmem>>) attributes {dimension_semantics = [], scalar_prefetch = 0 : i64, scratch_operands = 0 : i64, tpu.core_type = #tpu.core_type<tc>} {
    %c0 = arith.constant 0 : index
    %c0_0 = arith.constant 0 : index
    %0 = vector.load %arg0[%c0, %c0_0] : memref<8x16xf32, #tpu.memory_space<vmem>>, vector<8x16xf32>
    %c0_1 = arith.constant 0 : index
    %c0_2 = arith.constant 0 : index
    %1 = vector.load %arg1[%c0_1, %c0_2] : memref<8x32xf32, #tpu.memory_space<vmem>>, vector<8x32xf32>
    %c0_3 = arith.constant 0 : index
    %c0_4 = arith.constant 0 : index
    %2 = vector.load %arg2[%c0_3, %c0_4] : memref<8x32xf32, #tpu.memory_space<vmem>>, vector<8x32xf32>
    %c0_5 = arith.constant 0 : index
    %c0_6 = arith.constant 0 : index
    %3 = vector.load %arg3[%c0_5, %c0_6] : memref<8x64xf32, #tpu.memory_space<vmem>>, vector<8x64xf32>
    %c0_7 = arith.constant 0 : index
    %c0_8 = arith.constant 0 : index
    %c0_9 = arith.constant 0 : index
    %4 = vector.load %arg4[%c0_7, %c0_8, %c0_9] : memref<4x16x32xf32, #tpu.memory_space<vmem>>, vector<1x16x32xf32>
    %5 = vector.shape_cast %4 : vector<1x16x32xf32> to vector<16x32xf32>
    %cst = arith.constant dense<0.000000e+00> : vector<8x32xf32>
    %6 = tpu.matmul %0, %5, %cst {dimension_numbers = #tpu.dot_dimension_numbers<[1], [0], [0], [1], [0, 0, 1, 1], [], []>} : vector<8x16xf32>, vector<16x32xf32>, vector<8x32xf32> -> vector<8x32xf32>
    %c0_10 = arith.constant 0 : index
    %c0_11 = arith.constant 0 : index
    %c0_12 = arith.constant 0 : index
    %7 = vector.load %arg5[%c0_10, %c0_11, %c0_12] : memref<4x32x32xf32, #tpu.memory_space<vmem>>, vector<1x32x32xf32>
    %8 = vector.shape_cast %7 : vector<1x32x32xf32> to vector<32x32xf32>
    %cst_13 = arith.constant dense<0.000000e+00> : vector<8x32xf32>
    %9 = tpu.matmul %1, %8, %cst_13 {dimension_numbers = #tpu.dot_dimension_numbers<[1], [0], [0], [1], [0, 0, 1, 1], [], []>} : vector<8x32xf32>, vector<32x32xf32>, vector<8x32xf32> -> vector<8x32xf32>
    %10 = arith.addf %6, %9 : vector<8x32xf32>
    %c0_14 = arith.constant 0 : index
    %c0_15 = arith.constant 0 : index
    %c0_16 = arith.constant 0 : index
    %11 = vector.load %arg6[%c0_14, %c0_15, %c0_16] : memref<4x1x32xf32, #tpu.memory_space<vmem>>, vector<1x1x32xf32>
    %12 = vector.shape_cast %11 : vector<1x1x32xf32> to vector<1x32xf32>
    %13 = vector.broadcast %12 : vector<1x32xf32> to vector<8x32xf32>
    %14 = arith.addf %10, %13 : vector<8x32xf32>
    %15 = arith.negf %14 : vector<8x32xf32>
    %16 = math.exp %15 : vector<8x32xf32>
    %cst_17 = arith.constant 1.000000e+00 : f32
    %17 = vector.broadcast %cst_17 : f32 to vector<8x32xf32>
    %18 = arith.addf %17, %16 : vector<8x32xf32>
    %19 = arith.divf %17, %18 : vector<8x32xf32>
    %c1 = arith.constant 1 : index
    %c0_18 = arith.constant 0 : index
    %c0_19 = arith.constant 0 : index
    %20 = vector.load %arg4[%c1, %c0_18, %c0_19] : memref<4x16x32xf32, #tpu.memory_space<vmem>>, vector<1x16x32xf32>
    %21 = vector.shape_cast %20 : vector<1x16x32xf32> to vector<16x32xf32>
    %cst_20 = arith.constant dense<0.000000e+00> : vector<8x32xf32>
    %22 = tpu.matmul %0, %21, %cst_20 {dimension_numbers = #tpu.dot_dimension_numbers<[1], [0], [0], [1], [0, 0, 1, 1], [], []>} : vector<8x16xf32>, vector<16x32xf32>, vector<8x32xf32> -> vector<8x32xf32>
    %c1_21 = arith.constant 1 : index
    %c0_22 = arith.constant 0 : index
    %c0_23 = arith.constant 0 : index
    %23 = vector.load %arg5[%c1_21, %c0_22, %c0_23] : memref<4x32x32xf32, #tpu.memory_space<vmem>>, vector<1x32x32xf32>
    %24 = vector.shape_cast %23 : vector<1x32x32xf32> to vector<32x32xf32>
    %cst_24 = arith.constant dense<0.000000e+00> : vector<8x32xf32>
    %25 = tpu.matmul %1, %24, %cst_24 {dimension_numbers = #tpu.dot_dimension_numbers<[1], [0], [0], [1], [0, 0, 1, 1], [], []>} : vector<8x32xf32>, vector<32x32xf32>, vector<8x32xf32> -> vector<8x32xf32>
    %26 = arith.addf %22, %25 : vector<8x32xf32>
    %c1_25 = arith.constant 1 : index
    %c0_26 = arith.constant 0 : index
    %c0_27 = arith.constant 0 : index
    %27 = vector.load %arg6[%c1_25, %c0_26, %c0_27] : memref<4x1x32xf32, #tpu.memory_space<vmem>>, vector<1x1x32xf32>
    %28 = vector.shape_cast %27 : vector<1x1x32xf32> to vector<1x32xf32>
    %29 = vector.broadcast %28 : vector<1x32xf32> to vector<8x32xf32>
    %30 = arith.addf %26, %29 : vector<8x32xf32>
    %31 = arith.negf %30 : vector<8x32xf32>
    %32 = math.exp %31 : vector<8x32xf32>
    %cst_28 = arith.constant 1.000000e+00 : f32
    %33 = vector.broadcast %cst_28 : f32 to vector<8x32xf32>
    %34 = arith.addf %33, %32 : vector<8x32xf32>
    %35 = arith.divf %33, %34 : vector<8x32xf32>
    %c2 = arith.constant 2 : index
    %c0_29 = arith.constant 0 : index
    %c0_30 = arith.constant 0 : index
    %36 = vector.load %arg4[%c2, %c0_29, %c0_30] : memref<4x16x32xf32, #tpu.memory_space<vmem>>, vector<1x16x32xf32>
    %37 = vector.shape_cast %36 : vector<1x16x32xf32> to vector<16x32xf32>
    %cst_31 = arith.constant dense<0.000000e+00> : vector<8x32xf32>
    %38 = tpu.matmul %0, %37, %cst_31 {dimension_numbers = #tpu.dot_dimension_numbers<[1], [0], [0], [1], [0, 0, 1, 1], [], []>} : vector<8x16xf32>, vector<16x32xf32>, vector<8x32xf32> -> vector<8x32xf32>
    %c2_32 = arith.constant 2 : index
    %c0_33 = arith.constant 0 : index
    %c0_34 = arith.constant 0 : index
    %39 = vector.load %arg5[%c2_32, %c0_33, %c0_34] : memref<4x32x32xf32, #tpu.memory_space<vmem>>, vector<1x32x32xf32>
    %40 = vector.shape_cast %39 : vector<1x32x32xf32> to vector<32x32xf32>
    %cst_35 = arith.constant dense<0.000000e+00> : vector<8x32xf32>
    %41 = tpu.matmul %1, %40, %cst_35 {dimension_numbers = #tpu.dot_dimension_numbers<[1], [0], [0], [1], [0, 0, 1, 1], [], []>} : vector<8x32xf32>, vector<32x32xf32>, vector<8x32xf32> -> vector<8x32xf32>
    %42 = arith.addf %38, %41 : vector<8x32xf32>
    %c2_36 = arith.constant 2 : index
    %c0_37 = arith.constant 0 : index
    %c0_38 = arith.constant 0 : index
    %43 = vector.load %arg6[%c2_36, %c0_37, %c0_38] : memref<4x1x32xf32, #tpu.memory_space<vmem>>, vector<1x1x32xf32>
    %44 = vector.shape_cast %43 : vector<1x1x32xf32> to vector<1x32xf32>
    %45 = vector.broadcast %44 : vector<1x32xf32> to vector<8x32xf32>
    %46 = arith.addf %42, %45 : vector<8x32xf32>
    %47 = math.tanh %46 : vector<8x32xf32>
    %c3 = arith.constant 3 : index
    %c0_39 = arith.constant 0 : index
    %c0_40 = arith.constant 0 : index
    %48 = vector.load %arg4[%c3, %c0_39, %c0_40] : memref<4x16x32xf32, #tpu.memory_space<vmem>>, vector<1x16x32xf32>
    %49 = vector.shape_cast %48 : vector<1x16x32xf32> to vector<16x32xf32>
    %cst_41 = arith.constant dense<0.000000e+00> : vector<8x32xf32>
    %50 = tpu.matmul %0, %49, %cst_41 {dimension_numbers = #tpu.dot_dimension_numbers<[1], [0], [0], [1], [0, 0, 1, 1], [], []>} : vector<8x16xf32>, vector<16x32xf32>, vector<8x32xf32> -> vector<8x32xf32>
    %c3_42 = arith.constant 3 : index
    %c0_43 = arith.constant 0 : index
    %c0_44 = arith.constant 0 : index
    %51 = vector.load %arg5[%c3_42, %c0_43, %c0_44] : memref<4x32x32xf32, #tpu.memory_space<vmem>>, vector<1x32x32xf32>
    %52 = vector.shape_cast %51 : vector<1x32x32xf32> to vector<32x32xf32>
    %cst_45 = arith.constant dense<0.000000e+00> : vector<8x32xf32>
    %53 = tpu.matmul %1, %52, %cst_45 {dimension_numbers = #tpu.dot_dimension_numbers<[1], [0], [0], [1], [0, 0, 1, 1], [], []>} : vector<8x32xf32>, vector<32x32xf32>, vector<8x32xf32> -> vector<8x32xf32>
    %54 = arith.addf %50, %53 : vector<8x32xf32>
    %c3_46 = arith.constant 3 : index
    %c0_47 = arith.constant 0 : index
    %c0_48 = arith.constant 0 : index
    %55 = vector.load %arg6[%c3_46, %c0_47, %c0_48] : memref<4x1x32xf32, #tpu.memory_space<vmem>>, vector<1x1x32xf32>
    %56 = vector.shape_cast %55 : vector<1x1x32xf32> to vector<1x32xf32>
    %57 = vector.broadcast %56 : vector<1x32xf32> to vector<8x32xf32>
    %58 = arith.addf %54, %57 : vector<8x32xf32>
    %59 = arith.negf %58 : vector<8x32xf32>
    %60 = math.exp %59 : vector<8x32xf32>
    %cst_49 = arith.constant 1.000000e+00 : f32
    %61 = vector.broadcast %cst_49 : f32 to vector<8x32xf32>
    %62 = arith.addf %61, %60 : vector<8x32xf32>
    %63 = arith.divf %61, %62 : vector<8x32xf32>
    %64 = arith.mulf %35, %2 : vector<8x32xf32>
    %65 = arith.mulf %19, %47 : vector<8x32xf32>
    %66 = arith.addf %64, %65 : vector<8x32xf32>
    %67 = math.tanh %66 : vector<8x32xf32>
    %68 = arith.mulf %63, %67 : vector<8x32xf32>
    %c0_50 = arith.constant 0 : index
    %c0_51 = arith.constant 0 : index
    %69 = vector.load %arg15[%c0_50, %c0_51] : memref<8x32xf32, #tpu.memory_space<vmem>>, vector<8x32xf32>
    tpu.vector_store %arg15[%c0_50, %c0_51], %68 {strides = array<i32>} : memref<8x32xf32, #tpu.memory_space<vmem>>, vector<8x32xf32>,
    %c0_52 = arith.constant 0 : index
    %c0_53 = arith.constant 0 : index
    %70 = vector.load %arg16[%c0_52, %c0_53] : memref<8x32xf32, #tpu.memory_space<vmem>>, vector<8x32xf32>
    tpu.vector_store %arg16[%c0_52, %c0_53], %66 {strides = array<i32>} : memref<8x32xf32, #tpu.memory_space<vmem>>, vector<8x32xf32>,
    %c0_54 = arith.constant 0 : index
    %c0_55 = arith.constant 0 : index
    %71 = vector.load %arg7[%c0_54, %c0_55] : memref<32x32xf32, #tpu.memory_space<vmem>>, vector<32x32xf32>
    %cst_56 = arith.constant dense<0.000000e+00> : vector<8x32xf32>
    %72 = tpu.matmul %68, %71, %cst_56 {dimension_numbers = #tpu.dot_dimension_numbers<[1], [0], [0], [1], [0, 0, 1, 1], [], []>} : vector<8x32xf32>, vector<32x32xf32>, vector<8x32xf32> -> vector<8x32xf32>
    %c0_57 = arith.constant 0 : index
    %c0_58 = arith.constant 0 : index
    %73 = vector.load %arg8[%c0_57, %c0_58] : memref<64x32xf32, #tpu.memory_space<vmem>>, vector<64x32xf32>
    %cst_59 = arith.constant dense<0.000000e+00> : vector<8x32xf32>
    %74 = tpu.matmul %3, %73, %cst_59 {dimension_numbers = #tpu.dot_dimension_numbers<[1], [0], [0], [1], [0, 0, 1, 1], [], []>} : vector<8x64xf32>, vector<64x32xf32>, vector<8x32xf32> -> vector<8x32xf32>
    %75 = arith.addf %72, %74 : vector<8x32xf32>
    %c0_60 = arith.constant 0 : index
    %c0_61 = arith.constant 0 : index
    %76 = vector.load %arg9[%c0_60, %c0_61] : memref<1x32xf32, #tpu.memory_space<vmem>>, vector<1x32xf32>
    %77 = vector.broadcast %76 : vector<1x32xf32> to vector<8x32xf32>
    %78 = arith.addf %75, %77 : vector<8x32xf32>
    %c0_62 = arith.constant 0 : index
    %c0_63 = arith.constant 0 : index
    %79 = vector.load %arg17[%c0_62, %c0_63] : memref<8x32xf32, #tpu.memory_space<vmem>>, vector<8x32xf32>
    tpu.vector_store %arg17[%c0_62, %c0_63], %78 {strides = array<i32>} : memref<8x32xf32, #tpu.memory_space<vmem>>, vector<8x32xf32>,
    %c0_64 = arith.constant 0 : index
    %c0_65 = arith.constant 0 : index
    %80 = vector.load %arg10[%c0_64, %c0_65] : memref<1x64xf32, #tpu.memory_space<vmem>>, vector<1x64xf32>
    %81 = vector.broadcast %80 : vector<1x64xf32> to vector<8x64xf32>
    %82 = arith.mulf %3, %81 : vector<8x64xf32>
    %cst_66 = arith.constant dense<0.000000e+00> : vector<8xf32>
    %83 = vector.multi_reduction <add>, %82, %cst_66 [1] : vector<8x64xf32> to vector<8xf32>
    %84 = vector.shape_cast %83 : vector<8xf32> to vector<8x1xf32>
    %c0_67 = arith.constant 0 : index
    %c0_68 = arith.constant 0 : index
    %85 = vector.load %arg11[%c0_67, %c0_68] : memref<1x32xf32, #tpu.memory_space<vmem>>, vector<1x32xf32>
    %86 = vector.broadcast %85 : vector<1x32xf32> to vector<8x32xf32>
    %87 = arith.mulf %68, %86 : vector<8x32xf32>
    %cst_69 = arith.constant dense<0.000000e+00> : vector<8xf32>
    %88 = vector.multi_reduction <add>, %87, %cst_69 [1] : vector<8x32xf32> to vector<8xf32>
    %89 = vector.shape_cast %88 : vector<8xf32> to vector<8x1xf32>
    %90 = arith.addf %84, %89 : vector<8x1xf32>
    %c0_70 = arith.constant 0 : index
    %c0_71 = arith.constant 0 : index
    %91 = vector.load %arg12[%c0_70, %c0_71] : memref<1x32xf32, #tpu.memory_space<vmem>>, vector<1x32xf32>
    %92 = vector.broadcast %91 : vector<1x32xf32> to vector<8x32xf32>
    %93 = arith.mulf %66, %92 : vector<8x32xf32>
    %cst_72 = arith.constant dense<0.000000e+00> : vector<8xf32>
    %94 = vector.multi_reduction <add>, %93, %cst_72 [1] : vector<8x32xf32> to vector<8xf32>
    %95 = vector.shape_cast %94 : vector<8xf32> to vector<8x1xf32>
    %96 = arith.addf %90, %95 : vector<8x1xf32>
    %c0_73 = arith.constant 0 : index
    %c0_74 = arith.constant 0 : index
    %97 = vector.load %arg13[%c0_73, %c0_74] : memref<1x16xf32, #tpu.memory_space<vmem>>, vector<1x16xf32>
    %98 = vector.broadcast %97 : vector<1x16xf32> to vector<8x16xf32>
    %99 = arith.mulf %0, %98 : vector<8x16xf32>
    %cst_75 = arith.constant dense<0.000000e+00> : vector<8xf32>
    %100 = vector.multi_reduction <add>, %99, %cst_75 [1] : vector<8x16xf32> to vector<8xf32>
    %101 = vector.shape_cast %100 : vector<8xf32> to vector<8x1xf32>
    %102 = arith.addf %96, %101 : vector<8x1xf32>
    %c0_76 = arith.constant 0 : index
    %c0_77 = arith.constant 0 : index
    %103 = vector.load %arg14[%c0_76, %c0_77] : memref<1x1xf32, #tpu.memory_space<vmem>>, vector<1x1xf32>
    %104 = vector.broadcast %103 : vector<1x1xf32> to vector<8x1xf32>
    %105 = arith.addf %102, %104 : vector<8x1xf32>
    %106 = arith.negf %105 : vector<8x1xf32>
    %107 = math.exp %106 : vector<8x1xf32>
    %cst_78 = arith.constant 1.000000e+00 : f32
    %108 = vector.broadcast %cst_78 : f32 to vector<8x1xf32>
    %109 = arith.addf %108, %107 : vector<8x1xf32>
    %110 = arith.divf %108, %109 : vector<8x1xf32>
    %c0_79 = arith.constant 0 : index
    %c0_80 = arith.constant 0 : index
    %111 = vector.load %arg18[%c0_79, %c0_80] : memref<8x1xf32, #tpu.memory_space<vmem>>, vector<8x1xf32>
    tpu.vector_store %arg18[%c0_79, %c0_80], %110 {strides = array<i32>} : memref<8x1xf32, #tpu.memory_space<vmem>>, vector<8x1xf32>,
    return
  }
}

module attributes {stable_mosaic.version = 11 : i64} {
  func.func @_vocab_logits_kernel(%arg0: i32, %arg1: memref<8x32xf32, #tpu.memory_space<vmem>>, %arg2: memref<32x128xbf16, #tpu.memory_space<vmem>>, %arg3: memref<1x128xf32, #tpu.memory_space<vmem>>, %arg4: memref<8x128xf32, #tpu.memory_space<vmem>>, %arg5: memref<1x8x1xf32, #tpu.memory_space<vmem>>, %arg6: memref<1x8x1xf32, #tpu.memory_space<vmem>>) attributes {dimension_semantics = [#tpu.dimension_semantics<parallel>], iteration_bounds = array<i64: 1>, scalar_prefetch = 0 : i64, scratch_operands = 0 : i64, tpu.core_type = #tpu.core_type<tc>, window_params = [{pipeline_mode = #tpu.pipeline_mode<synchronous>, transform_indices = @transform_0, window_bounds = array<i64: 8, 32>}, {transform_indices = @transform_1, window_bounds = array<i64: 32, 128>}, {transform_indices = @transform_2, window_bounds = array<i64: 1, 128>}, {transform_indices = @transform_3, window_bounds = array<i64: 8, 128>}, {transform_indices = @transform_4, window_bounds = array<i64: 1, 8, 1>}, {transform_indices = @transform_5, window_bounds = array<i64: 1, 8, 1>}]} {
    %c0 = arith.constant 0 : index
    %c0_0 = arith.constant 0 : index
    %0 = vector.load %arg1[%c0, %c0_0] : memref<8x32xf32, #tpu.memory_space<vmem>>, vector<8x32xf32>
    %1 = arith.truncf %0 : vector<8x32xf32> to vector<8x32xbf16>
    %c0_1 = arith.constant 0 : index
    %c0_2 = arith.constant 0 : index
    %2 = vector.load %arg2[%c0_1, %c0_2] : memref<32x128xbf16, #tpu.memory_space<vmem>>, vector<32x128xbf16>
    %cst = arith.constant dense<0.000000e+00> : vector<8x128xf32>
    %3 = tpu.matmul %1, %2, %cst {dimension_numbers = #tpu.dot_dimension_numbers<[1], [0], [0], [1], [0, 0, 1, 1], [], []>} : vector<8x32xbf16>, vector<32x128xbf16>, vector<8x128xf32> -> vector<8x128xf32>
    %c0_3 = arith.constant 0 : index
    %c0_4 = arith.constant 0 : index
    %4 = vector.load %arg3[%c0_3, %c0_4] : memref<1x128xf32, #tpu.memory_space<vmem>>, vector<1x128xf32>
    %5 = vector.broadcast %4 : vector<1x128xf32> to vector<8x128xf32>
    %6 = arith.addf %3, %5 : vector<8x128xf32>
    %c0_5 = arith.constant 0 : index
    %c0_6 = arith.constant 0 : index
    %7 = vector.load %arg4[%c0_5, %c0_6] : memref<8x128xf32, #tpu.memory_space<vmem>>, vector<8x128xf32>
    tpu.vector_store %arg4[%c0_5, %c0_6], %6 {strides = array<i32>} : memref<8x128xf32, #tpu.memory_space<vmem>>, vector<8x128xf32>,
    %cst_7 = arith.constant dense<0xFF800000> : vector<8xf32>
    %8 = vector.multi_reduction <maximumf>, %6, %cst_7 [1] : vector<8x128xf32> to vector<8xf32>
    %9 = vector.shape_cast %8 : vector<8xf32> to vector<8x1xf32>
    %c0_8 = arith.constant 0 : index
    %c0_9 = arith.constant 0 : index
    %c0_10 = arith.constant 0 : index
    %10 = vector.load %arg5[%c0_8, %c0_9, %c0_10] : memref<1x8x1xf32, #tpu.memory_space<vmem>>, vector<1x8x1xf32>
    %11 = vector.shape_cast %10 : vector<1x8x1xf32> to vector<8x1xf32>
    %12 = vector.shape_cast %9 : vector<8x1xf32> to vector<1x8x1xf32>
    tpu.vector_store %arg5[%c0_8, %c0_9, %c0_10], %12 {strides = array<i32>} : memref<1x8x1xf32, #tpu.memory_space<vmem>>, vector<1x8x1xf32>,
    %13 = vector.broadcast %9 : vector<8x1xf32> to vector<8x128xf32>
    %14 = arith.subf %6, %13 : vector<8x128xf32>
    %15 = math.exp %14 : vector<8x128xf32>
    %cst_11 = arith.constant dense<0.000000e+00> : vector<8xf32>
    %16 = vector.multi_reduction <add>, %15, %cst_11 [1] : vector<8x128xf32> to vector<8xf32>
    %17 = vector.shape_cast %16 : vector<8xf32> to vector<8x1xf32>
    %c0_12 = arith.constant 0 : index
    %c0_13 = arith.constant 0 : index
    %c0_14 = arith.constant 0 : index
    %18 = vector.load %arg6[%c0_12, %c0_13, %c0_14] : memref<1x8x1xf32, #tpu.memory_space<vmem>>, vector<1x8x1xf32>
    %19 = vector.shape_cast %18 : vector<1x8x1xf32> to vector<8x1xf32>
    %20 = vector.shape_cast %17 : vector<8x1xf32> to vector<1x8x1xf32>
    tpu.vector_store %arg6[%c0_12, %c0_13, %c0_14], %20 {strides = array<i32>} : memref<1x8x1xf32, #tpu.memory_space<vmem>>, vector<1x8x1xf32>,
    return
  }
  func.func @transform_0(%arg0: i32) -> (i32, i32) {
    %c0_i32 = arith.constant 0 : i32
    %c0_i32_0 = arith.constant 0 : i32
    %c0_i32_1 = arith.constant 0 : i32
    return %c0_i32, %c0_i32_0 : i32, i32
  }
  func.func @transform_1(%arg0: i32) -> (i32, i32) {
    %c0_i32 = arith.constant 0 : i32
    %c0_i32_0 = arith.constant 0 : i32
    return %c0_i32, %arg0 : i32, i32
  }
  func.func @transform_2(%arg0: i32) -> (i32, i32) {
    %c0_i32 = arith.constant 0 : i32
    %c0_i32_0 = arith.constant 0 : i32
    return %c0_i32, %arg0 : i32, i32
  }
  func.func @transform_3(%arg0: i32) -> (i32, i32) {
    %c0_i32 = arith.constant 0 : i32
    %c0_i32_0 = arith.constant 0 : i32
    return %c0_i32, %arg0 : i32, i32
  }
  func.func @transform_4(%arg0: i32) -> (i32, i32, i32) {
    %c0_i32 = arith.constant 0 : i32
    %c0_i32_0 = arith.constant 0 : i32
    %c0_i32_1 = arith.constant 0 : i32
    return %arg0, %c0_i32, %c0_i32_0 : i32, i32, i32
  }
  func.func @transform_5(%arg0: i32) -> (i32, i32, i32) {
    %c0_i32 = arith.constant 0 : i32
    %c0_i32_0 = arith.constant 0 : i32
    %c0_i32_1 = arith.constant 0 : i32
    return %arg0, %c0_i32, %c0_i32_0 : i32, i32, i32
  }
}

module attributes {stable_mosaic.version = 11 : i64} {
  func.func @_softmax_normalize_kernel(%arg0: i32, %arg1: memref<8x128xf32, #tpu.memory_space<vmem>>, %arg2: memref<8x1xf32, #tpu.memory_space<vmem>>, %arg3: memref<8x128xf32, #tpu.memory_space<vmem>>) attributes {dimension_semantics = [#tpu.dimension_semantics<parallel>], iteration_bounds = array<i64: 1>, scalar_prefetch = 0 : i64, scratch_operands = 0 : i64, tpu.core_type = #tpu.core_type<tc>, window_params = [{transform_indices = @transform_0, window_bounds = array<i64: 8, 128>}, {pipeline_mode = #tpu.pipeline_mode<synchronous>, transform_indices = @transform_1, window_bounds = array<i64: 8, 1>}, {transform_indices = @transform_2, window_bounds = array<i64: 8, 128>}]} {
    %c0 = arith.constant 0 : index
    %c0_0 = arith.constant 0 : index
    %0 = vector.load %arg1[%c0, %c0_0] : memref<8x128xf32, #tpu.memory_space<vmem>>, vector<8x128xf32>
    %c0_1 = arith.constant 0 : index
    %c0_2 = arith.constant 0 : index
    %1 = vector.load %arg2[%c0_1, %c0_2] : memref<8x1xf32, #tpu.memory_space<vmem>>, vector<8x1xf32>
    %2 = vector.broadcast %1 : vector<8x1xf32> to vector<8x128xf32>
    %3 = arith.subf %0, %2 : vector<8x128xf32>
    %4 = math.exp %3 : vector<8x128xf32>
    %c0_3 = arith.constant 0 : index
    %c0_4 = arith.constant 0 : index
    %5 = vector.load %arg3[%c0_3, %c0_4] : memref<8x128xf32, #tpu.memory_space<vmem>>, vector<8x128xf32>
    tpu.vector_store %arg3[%c0_3, %c0_4], %4 {strides = array<i32>} : memref<8x128xf32, #tpu.memory_space<vmem>>, vector<8x128xf32>,
    return
  }
  func.func @transform_0(%arg0: i32) -> (i32, i32) {
    %c0_i32 = arith.constant 0 : i32
    %c0_i32_0 = arith.constant 0 : i32
    return %c0_i32, %arg0 : i32, i32
  }
  func.func @transform_1(%arg0: i32) -> (i32, i32) {
    %c0_i32 = arith.constant 0 : i32
    %c0_i32_0 = arith.constant 0 : i32
    %c0_i32_1 = arith.constant 0 : i32
    return %c0_i32, %c0_i32_0 : i32, i32
  }
  func.func @transform_2(%arg0: i32) -> (i32, i32) {
    %c0_i32 = arith.constant 0 : i32
    %c0_i32_0 = arith.constant 0 : i32
    return %c0_i32, %arg0 : i32, i32
  }
}

</mosaic_0001>

<bundles_post_ra>
// kernel: decoder_forward.5
= control target key start
LH: loop header
LB: loop body
LE: loop exit
PB: predicated region body
PF: predicated region fallthrough
CT: control target
= control target key end

     0   :  { %v30_v0 = vmov 0   ;;  %s55_s1 = inlined_call_operand.vmem [shape: f32[8,1], index: 1, kind: input, shape index: {}]   ;;  %s56_s0 = inlined_call_operand.vmem [shape: f32[8,128], index: 0, kind: input, shape index: {}, may-alias: {0,2}]   ;;  %s57_s2 = inlined_call_operand.vmem [shape: f32[8,128], index: 2, kind: output, shape index: {}, may-alias: {0,2}]  }
   0x1   :  { %27 = vset.pattern.permute.xlu0 %v30_v0  ;;  %v12_v1 = vld [vmem:[%s55_s1] sm:$0xff] }
   0x2   :  { %15 = vperm.xlu0 %27, %v12_v1   ;;  %v11_v2 = vld [vmem:[%s56_s0] sm:$0xff] }
  0x74   :  { %v16_v3 = vpop.permute.xlu0 %15 }
  0x75   :  { %v18_v4 = vsub.f32 %v11_v2, %v16_v3 }
  0x77   :  { %v19_v5 = vmul.f32 1.442695, %v18_v4 }
  0x79   :  { %28 = vpow2.f32 %v19_v5 }
  0x7f   :  { %v29_v6 = vpop.eup %28 }
  0x80   :  { %21 = vst [vmem:[%s57_s2] sm:$0xff] %v29_v6 }

// kernel: decoder_forward.4
= control target key start
LH: loop header
LB: loop body
LE: loop exit
PB: predicated region body
PF: predicated region fallthrough
CT: control target
= control target key end

     0   :  { %vm40_vm0 = vcmask 261120   ;;  %vm60_vm1 = vcmask 7168   ;;  %s145_s1 = inlined_call_operand.vmem [shape: bf16[32,128], index: 1, kind: input, shape index: {}]   ;;  %s146_s0 = inlined_call_operand.vmem [shape: f32[8,32], index: 0, kind: input, shape index: {}]   ;;  %s147_s2 = inlined_call_operand.vmem [shape: f32[1,128], index: 2, kind: input, shape index: {}]   ;;  %s148_s3 = inlined_call_operand.vmem [shape: f32[8,128], index: 3, kind: output, shape index: {0}]   ;;  %s149_s4 = inlined_call_operand.vmem [shape: f32[1,8,1], index: 4, kind: output, shape index: {1}]   ;;  %s150_s5 = inlined_call_operand.vmem [shape: f32[1,8,1], index: 5, kind: output, shape index: {2}]  }
   0x1   :  { %v90_v0 = vld [vmem:[%s145_s1 + $0x8] sm:$0xff]  ;;  %v89_v1 = vld [vmem:[%s145_s1] sm:$0xff] }
   0x2   :  { %50 = vmatpush.bf16.msra.mxu0 %v90_v0  ;;  %v18_v2 = vld [vmem:[%s146_s0] sm:$0xff] }
   0x3   :  { %v19_v3 = vpack.c.bf16 %v18_v2, %v18_v2  ;;  %v91_v4 = vld [vmem:[%s147_s2] ss:$0 sm:$0xff] }
   0x6   :  { %51 = vmatpush.bf16.msra.mxu0 %v89_v1 }
   0x9   :  { %88 = vmatmul.msk.bf16.vlgmr.msra.gmra.mxu0 %vm40_vm0, %v19_v3 }
  0x86   :  { %v53_v5 = vpop.f32.mrf.mxu0 }
  0x87   :  { %v54_v6 = vadd.f32 %v91_v4, %v53_v5 }
  0x89   :  { %57 = vst [vmem:[%s148_s3] sm:$0xff] %v54_v6  ;;  %58 = vmax.xlane.f32.xlu0 %v54_v6 }
  0x8e   :  { %v55_v7 = vpop.f32.mrf.mxu0 }
  0xfc   :  { %v59_v8 = vpop.xlane.xlu0 %58 }
  0xfd   :  { %61 = vst.msk [vmem:[%s149_s4] sm:$0xff] %vm60_vm1, %v59_v8  ;;  %v62_v9 = vsub.f32 %v54_v6, %v59_v8 }
  0xff   :  { %v63_v10 = vmul.f32 1.442695, %v62_v9 }
 0x101   :  { %92 = vpow2.f32 %v63_v10 }
 0x107   :  { %v93_v11 = vpop.eup %92 }
 0x108   :  { %65 = vadd.xlane.f32.xlu0 %v93_v11 }
 0x17b   :  { %v66_v12 = vpop.xlane.xlu0 %65 }
 0x17c   :  { %67 = vst.msk [vmem:[%s150_s5] sm:$0xff] %vm60_vm1, %v66_v12 }

// kernel: decoder_forward.3
= control target key start
LH: loop header
LB: loop body
LE: loop exit
PB: predicated region body
PF: predicated region fallthrough
CT: control target
= control target key end

     0   :  { %s899_s0 = inlined_call_operand.vmem [shape: f32[8,16], index: 0, kind: input, shape index: {}]   ;;  %s900_s1 = inlined_call_operand.vmem [shape: f32[8,32], index: 1, kind: input, shape index: {}, may-alias: {1,15}]   ;;  %s901_s2 = inlined_call_operand.vmem [shape: f32[8,32], index: 2, kind: input, shape index: {}, may-alias: {2,16}]   ;;  %s902_s3 = inlined_call_operand.vmem [shape: f32[8,64], index: 3, kind: input, shape index: {}]   ;;  %s903_s4 = inlined_call_operand.hbm [shape: f32[4,16,32], index: 4, kind: input, shape index: {}]   ;;  %s904_s5 = inlined_call_operand.vmem [shape: f32[4,32,32], index: 5, kind: input, shape index: {}]   ;;  %s905_s6 = inlined_call_operand.vmem [shape: f32[4,1,32], index: 6, kind: input, shape index: {}]   ;;  %s906_s7 = inlined_call_operand.hbm [shape: f32[32,32], index: 7, kind: input, shape index: {}]   ;;  %s907_s8 = inlined_call_operand.vmem [shape: f32[64,32], index: 8, kind: input, shape index: {}]   ;;  %s908_s9 = inlined_call_operand.vmem [shape: f32[1,32], index: 9, kind: input, shape index: {}]   ;;  %s909_s10 = inlined_call_operand.vmem [shape: f32[1,64], index: 10, kind: input, shape index: {}]   ;;  %s910_s11 = inlined_call_operand.vmem [shape: f32[1,32], index: 11, kind: input, shape index: {}]   ;;  %s911_s12 = inlined_call_operand.vmem [shape: f32[1,32], index: 12, kind: input, shape index: {}]   ;;  %s912_s13 = inlined_call_operand.vmem [shape: f32[1,16], index: 13, kind: input, shape index: {}]   ;;  %s913_s14 = inlined_call_operand.<no memory space> [shape: f32[1,1], index: 14, kind: input, shape index: {}]   ;;  %s914_s15 = inlined_call_operand.vmem [shape: f32[8,32], index: 15, kind: output, shape index: {0}, may-alias: {1,15}]   ;;  %s915_s16 = inlined_call_operand.vmem [shape: f32[8,32], index: 16, kind: output, shape index: {1}, may-alias: {2,16}]   ;;  %s916_s17 = inlined_call_operand.vmem [shape: f32[8,32], index: 17, kind: output, shape index: {2}]   ;;  %s917_s18 = inlined_call_operand.vmem [shape: f32[8,1], index: 18, kind: output, shape index: {3}]  }
   0x1   :  { %918 = sst [smem:[#allocation9_spill]] %s899_s0  ;;  %v24_v0 = vstv %s913_s14 }
   0x2   :  { %919 = sst [smem:[#allocation10_spill]] %s900_s1  ;;  %25 = vst [vmem:[#allocation2] sm:$0x1] %v24_v0 }
   0x3   :  { %920 = sst [smem:[#allocation11_spill]] %s901_s2 }
   0x4   :  { %26 = vsyncpa [#allocation4], 0  ;;  %s40_s0 = sshll.u32 %s903_s4, 4  ;;  %s41_s0 = int_to_ptr.hbm [resolvable:$true] %s40_s0 }
   0x5   :  { %27 = vsyncpa [#allocation6], 0  ;;  %s637_s19 = smov [#allocation3]   ;;  %s57_s22 = sshll.u32 %s906_s7, 4  ;;  %s58_s22 = int_to_ptr.hbm [resolvable:$true] %s57_s22 }
   0x6   :  { %s42_s1 = sshll.u32 %s637_s19, 4  ;;  %s638_s2 = smov 128   ;;  %s43_s1 = int_to_ptr.vmem [resolvable:$true] %s42_s1 }
   0x7   :  { %s639_s23 = smov 8   ;;  %s640_s14 = smov [#allocation5]  }
   0x8   :  { %48 = dma.hbm_to_vmem [thread:$0]  %s41_s0, 1024, %s43_s1, [#allocation4], %s638_s2, %s638_s2, %s639_s23  }
   0x9   :  { %s59_s24 = sshll.u32 %s640_s14, 4  ;;  %s60_s24 = int_to_ptr.vmem [resolvable:$true] %s59_s24 }
   0xa   :  { %65 = dma.hbm_to_vmem [thread:$0]  %s58_s22, 512, %s60_s24, [#allocation6], %s638_s2, %s638_s2, %s639_s23  }
   0xb   :  { %633 = dma.done.wait [#allocation4], 1024  }
   0xc   :  { %634 = vsyncadd [#allocation4], 4294966272 }
   0xd   :  { %635 = dma.done.wait [#allocation6], 512  }
   0xe   :  { %636 = vsyncadd [#allocation6], 4294966784  ;;  %v93_v1 = vld [vmem:[#allocation3 + $0x8] sm:$0xff]  ;;  %v97_v2 = vld [vmem:[%s904_s5 + $0x18] sm:$0xff]  ;;  %s921_s27 = sld [smem:[#allocation9_spill]]  ;;  %vm122_vm0 = vcmask 130048  }
   0xf   :  { %v92_v3 = vld [vmem:[#allocation3] sm:$0xff]  ;;  %140 = vmatpush.msra.mxu2 %v93_v1  ;;  %114 = vmatpush.msra.mxu0 %v97_v2  ;;  %v96_v5 = vld [vmem:[%s904_s5 + $0x10] sm:$0xff]  ;;  %v528_v6 = vld [vmem:[%s904_s5 + $0x38] sm:$0xff]  ;;  %s922_s24 = sld [smem:[#allocation10_spill]]  ;;  %vm98_vm1 = vcmask 261120   ;;  %vm390_vm2 = vcmask 523264  }
  0x10   :  { %v95_v7 = vld [vmem:[%s904_s5 + $0x8] sm:$0xff]  ;;  %v172_v8 = vld [vmem:[#allocation3 + $0x18] sm:$0xff]  ;;  %v527_v9 = vld [vmem:[%s904_s5 + $0x30] sm:$0xff]  ;;  %s923_s0 = sld [smem:[#allocation11_spill]] }
  0x11   :  { %141 = vmatpush.msra.mxu2 %v92_v3  ;;  %115 = vmatpush.msra.mxu0 %v96_v5  ;;  %v94_v10 = vld [vmem:[%s904_s5] sm:$0xff]  ;;  %v171_v11 = vld [vmem:[#allocation3 + $0x10] sm:$0xff]  ;;  %v526_v13 = vld [vmem:[%s904_s5 + $0x28] sm:$0xff] }
  0x12   :  { %212 = vmatpush.msra.mxu3 %v172_v8  ;;  %v525_v14 = vld [vmem:[%s904_s5 + $0x20] sm:$0xff]  ;;  %v543_v15 = vld [vmem:[%s904_s5 + $0x78] sm:$0xff]  ;;  %v542_v16 = vld [vmem:[%s904_s5 + $0x70] sm:$0xff] }
  0x13   :  { %190 = vmatpush.msrb.mxu2 %v528_v6  ;;  %116 = vmatpush.msra.mxu0 %v95_v7  ;;  %v245_v17 = vld [vmem:[#allocation3 + $0x28] sm:$0xff]  ;;  %v536_v18 = vld [vmem:[%s904_s5 + $0x58] sm:$0xff]  ;;  %v244_v21 = vld [vmem:[#allocation3 + $0x20] sm:$0xff] }
  0x14   :  { %v751_v4 = vld [vmem:[%s921_s27] sm:$0xff]  ;;  %213 = vmatpush.msra.mxu3 %v171_v11  ;;  %v541_v20 = vld [vmem:[%s904_s5 + $0x68] sm:$0xff]  ;;  %v535_v22 = vld [vmem:[%s904_s5 + $0x50] sm:$0xff]  ;;  %263 = vmatpush.msra.mxu1 %v536_v18 }
  0x15   :  { %523 = vmatmul.msk.f32.vlgmr.msra.gmra.mxu2 %vm122_vm0, %v751_v4  ;;  %v89_v12 = vld [vmem:[%s922_s24] sm:$0xff]  ;;  %117 = vmatpush.msra.mxu0 %v94_v10  ;;  %v299_v23 = vld [vmem:[#allocation3 + $0x30] sm:$0xff]  ;;  %v534_v25 = vld [vmem:[%s904_s5 + $0x48] sm:$0xff] }
  0x16   :  { %191 = vmatpush.msrb.mxu2 %v527_v9  ;;  %522 = vmatmul.msk.f32.vlgmr.msra.gmra.mxu0 %vm98_vm1, %v89_v12  ;;  %v300_v19 = vld [vmem:[#allocation3 + $0x38] sm:$0xff]  ;;  %v556_v34 = vld [vmem:[%s905_s6 + $0x1] ss:$0 sm:$0xff]  ;;  %v388_v39 = vld [vmem:[%s907_s8 + $0x30] sm:$0xff] }
  0x17   :  { %530 = vmatmul.msk.f32.vlgmr.msra.gmra.mxu3 %vm122_vm0, %v751_v4  ;;  %318 = vmatpush.msrb.mxu0 %v543_v15  ;;  %v540_v24 = vld [vmem:[%s904_s5 + $0x60] sm:$0xff]  ;;  %v389_v38 = vld [vmem:[%s907_s8 + $0x38] sm:$0xff]  ;;  %v387_v50 = vld [vmem:[%s907_s8 + $0x28] sm:$0xff] }
  0x18   :  { %192 = vmatpush.msrb.mxu2 %v526_v13  ;;  %285 = vmatpush.msrb.mxu3 %v245_v17  ;;  %v533_v26 = vld [vmem:[%s904_s5 + $0x40] sm:$0xff]  ;;  %v380_v51 = vld [vmem:[#allocation5 + $0x10] sm:$0xff]  ;;  %v379_v55 = vld [vmem:[#allocation5 + $0x8] sm:$0xff] }
  0x19   :  { %319 = vmatpush.msrb.mxu0 %v542_v16  ;;  %264 = vmatpush.msra.mxu1 %v535_v22  ;;  %v555_v28 = vld [vmem:[%s905_s6] ss:$0 sm:$0xff]  ;;  %v557_v48 = vld [vmem:[%s905_s6 + $0x3] ss:$0 sm:$0xff]  ;;  %v385_v56 = vld [vmem:[%s907_s8 + $0x18] sm:$0xff] }
  0x1a   :  { %193 = vmatpush.msrb.mxu2 %v525_v14  ;;  %286 = vmatpush.msrb.mxu3 %v244_v21  ;;  %v381_v40 = vld [vmem:[#allocation5 + $0x18] sm:$0xff]  ;;  %v378_v57 = vld [vmem:[#allocation5] sm:$0xff]  ;;  %v384_v1 = vld [vmem:[%s907_s8 + $0x10] sm:$0xff] }
  0x1b   :  { %320 = vmatpush.msrb.mxu0 %v541_v20  ;;  %265 = vmatpush.msra.mxu1 %v534_v25  ;;  %v560_v41 = vld [vmem:[%s909_s10] ss:$0 sm:$0xff]  ;;  %v383_v2 = vld [vmem:[%s907_s8 + $0x8] sm:$0xff]  ;;  %v558_v6 = vld [vmem:[%s905_s6 + $0x2] ss:$0 sm:$0xff] }
  0x1c   :  { %340 = vmatpush.msra.mxu2 %v300_v19  ;;  %429 = vmatpush.msra.mxu3 %v381_v40  ;;  %v91_v44 = vld [vmem:[%s902_s3] sm:$0xff] }
  0x1d   :  { %529 = vmatmul.msk.f32.vlgmr.msrb.gmra.mxu2 %vm98_vm1, %v89_v12  ;;  %321 = vmatpush.msrb.mxu0 %v540_v24  ;;  %v447_v47 = vmul.f32 %v560_v41, %v91_v44  ;;  %v386_v52 = vld [vmem:[%s907_s8 + $0x20] sm:$0xff] }
  0x1e   :  { %341 = vmatpush.msra.mxu2 %v299_v23  ;;  %544 = vmatmul.msk.f32.vlgmr.msrb.gmra.mxu0 %vm98_vm1, %v89_v12  ;;  %v382_v8 = vld [vmem:[%s907_s8] sm:$0xff] }
  0x1f   :  { %538 = vmatmul.msk.f32.vlgmr.msrb.gmra.mxu3 %vm122_vm0, %v751_v4  ;;  %266 = vmatpush.msra.mxu1 %v533_v26  ;;  %v448_v54 = vsel %vm390_vm2, %v447_v47, 0.0 }
  0x20   :  { %537 = vmatmul.msk.f32.vlgmr.msra.gmra.mxu1 %vm98_vm1, %v89_v12  ;;  %430 = vmatpush.msra.mxu3 %v380_v51 }
  0x21   :  { %402 = vmatpush.msrb.mxu1 %v389_v38  ;;  %449 = vadd.xlane.f32.xlu0 %v448_v54 }
  0x22   :  { %431 = vmatpush.msra.mxu3 %v379_v55 }
  0x23   :  { %403 = vmatpush.msrb.mxu1 %v388_v39 }
  0x24   :  { %432 = vmatpush.msra.mxu3 %v378_v57 }
  0x25   :  { %545 = vmatmul.msk.f32.vlgmr.msra.gmra.mxu2 %vm122_vm0, %v751_v4  ;;  %404 = vmatpush.msrb.mxu1 %v387_v50 }
  0x27   :  { %405 = vmatpush.msrb.mxu1 %v386_v52 }
  0x29   :  { %406 = vmatpush.msrb.mxu1 %v385_v56 }
  0x2b   :  { %407 = vmatpush.msrb.mxu1 %v384_v1  ;;  %v564_v1 = vld [vmem:[%s908_s9] ss:$0 sm:$0xff] }
  0x2d   :  { %408 = vmatpush.msrb.mxu1 %v383_v2 }
  0x2f   :  { %409 = vmatpush.msrb.mxu1 %v382_v8 }
  0x30   :  { %548 = vmatmul.msk.f32.vlgmr.msrb.gmra.mxu1 %vm390_vm2, %v91_v44  ;;  %vm502_vm2 = vcmask 7168  }
  0x93   :  { %v119_v27 = vpop.f32.mrf.mxu0 }
  0x94   :  { %v450_v54 = vpop.xlane.xlu0 %449 }
  0x98   :  { %v143_v29 = vpop.f32.mrf.mxu2 }
  0x99   :  { %v144_v30 = vadd.f32 %v143_v29, %v119_v27  ;;  %v90_v27 = vld [vmem:[%s923_s0] sm:$0xff] }
  0x9a   :  { %v215_v33 = vpop.f32.mrf.mxu3 }
  0x9b   :  { %v150_v31 = vadd.f32 %v555_v28, %v144_v30  ;;  %v323_v46 = vpop.f32.mrf.mxu0 }
  0x9d   :  { %v524_v32 = vmul.f32 -1.442695, %v150_v31  ;;  %v268_v59 = vpop.f32.mrf.mxu1 }
  0x9f   :  { %565 = vpow2.f32 %v524_v32 }
  0xa0   :  { %v195_v35 = vpop.f32.mrf.mxu2 }
  0xa1   :  { %v216_v36 = vadd.f32 %v215_v33, %v195_v35 }
  0xa2   :  { %v288_v60 = vpop.f32.mrf.mxu3 }
  0xa3   :  { %v223_v37 = vadd.f32 %v556_v34, %v216_v36  ;;  %v289_v5 = vadd.f32 %v288_v60, %v268_v59  ;;  %v559_v36 = vld [vmem:[%s911_s12] ss:$0 sm:$0xff] }
  0xa4   :  { %v563_v59 = vld [vmem:[#allocation2] ss:$0 sm:$0xff] }
  0xa5   :  { %v566_v42 = vpop.eup %565  ;;  %v532_v43 = vmul.f32 -1.442695, %v223_v37  ;;  %v296_v9 = vadd.f32 %v558_v6, %v289_v5 }
  0xa6   :  { %v831_v45 = vadd.f32 1.0, %v566_v42  ;;  %v562_v42 = vld [vmem:[%s912_s13] ss:$0 sm:$0xff] }
  0xa7   :  { %567 = vpow2.f32 %v532_v43  ;;  %v473_v47 = vmul.f32 %v562_v42, %v751_v4 }
  0xa8   :  { %569 = vrcp.f32 %v831_v45  ;;  %v343_v49 = vpop.f32.mrf.mxu2  ;;  %v166_v16 = vand.u32 2147483648, %v831_v45  ;;  %vm160_vm4 = vweird.f32 %v831_v45  ;;  %v164_v18 = vand.u32 2147483647, %v831_v45 }
  0xa9   :  { %v344_v53 = vadd.f32 %v343_v49, %v323_v46  ;;  %v474_v52 = vsel %vm122_vm0, %v473_v47, 0.0 }
  0xaa   :  { %v167_v23 = vor.u32 1.1754944e-38, %v166_v16  ;;  %vm165_vm7 = vcmp.eq.f32.partialorder %v164_v18, 8.507059e+37 }
  0xab   :  { %v351_v58 = vadd.f32 %v557_v48, %v344_v53  ;;  %v561_v48 = vld [vmem:[%s910_s11] ss:$0 sm:$0xff] }
  0xad   :  { %v568_v61 = vpop.eup %567  ;;  %v547_v62 = vmul.f32 -1.442695, %v351_v58 }
  0xae   :  { %v570_v63 = vpop.eup %569  ;;  %v227_v0 = vadd.f32 1.0, %v568_v61 }
  0xaf   :  { %v156_v3 = vmul.f32 %v570_v63, %v831_v45  ;;  %571 = vpow2.f32 %v547_v62  ;;  %vm161_vm3 = vweird.f32 %v570_v63 }
  0xb0   :  { %573 = vrcp.f32 %v227_v0  ;;  %vm162_vm5 = vmor %vm160_vm4, %vm161_vm3  ;;  %v239_v19 = vand.u32 2147483648, %v227_v0  ;;  %v237_v22 = vand.u32 2147483647, %v227_v0  ;;  %vm233_vm8 = vweird.f32 %v227_v0 }
  0xb1   :  { %v157_v7 = vsub.f32 1.0, %v156_v3  ;;  %575 = vtanh.f32 %v296_v9 }
  0xb2   :  { %v240_v29 = vor.u32 1.1754944e-38, %v239_v19  ;;  %vm238_vm10 = vcmp.eq.f32.partialorder %v237_v22, 8.507059e+37 }
  0xb3   :  { %v158_v10 = vmul.f32 %v570_v63, %v157_v7 }
  0xb5   :  { %v572_v11 = vpop.eup %571  ;;  %v159_v15 = vadd.f32 %v570_v63, %v158_v10 }
  0xb6   :  { %v574_v12 = vpop.eup %573  ;;  %v355_v13 = vadd.f32 1.0, %v572_v11 }
  0xb7   :  { %v229_v14 = vmul.f32 %v574_v12, %v227_v0  ;;  %v163_v20 = vsel %vm162_vm5, %v570_v63, %v159_v15  ;;  %vm234_vm6 = vweird.f32 %v574_v12  ;;  %v576_v24 = vpop.eup %575  ;;  %v411_v0 = vpop.f32.mrf.mxu1 }
  0xb8   :  { %577 = vrcp.f32 %v355_v13  ;;  %v168_v28 = vsel %vm165_vm7, %v167_v23, %v163_v20  ;;  %vm235_vm9 = vmor %vm233_vm8, %vm234_vm6  ;;  %v367_v39 = vand.u32 2147483648, %v355_v13  ;;  %vm361_vm12 = vweird.f32 %v355_v13 }
  0xb9   :  { %v230_v17 = vsub.f32 1.0, %v229_v14  ;;  %v372_v35 = vmul.f32 %v576_v24, %v168_v28  ;;  %v365_v43 = vand.u32 2147483647, %v355_v13 }
  0xba   :  { %v368_v46 = vor.u32 1.1754944e-38, %v367_v39 }
  0xbb   :  { %v231_v21 = vmul.f32 %v574_v12, %v230_v17  ;;  %vm366_vm14 = vcmp.eq.f32.partialorder %v365_v43, 8.507059e+37 }
  0xbd   :  { %v232_v25 = vadd.f32 %v574_v12, %v231_v21 }
  0xbe   :  { %v578_v26 = vpop.eup %577 }
  0xbf   :  { %v357_v30 = vmul.f32 %v578_v26, %v355_v13  ;;  %v236_v31 = vsel %vm235_vm9, %v574_v12, %v232_v25  ;;  %vm362_vm11 = vweird.f32 %v578_v26 }
  0xc0   :  { %v241_v32 = vsel %vm238_vm10, %v240_v29, %v236_v31  ;;  %vm363_vm13 = vmor %vm361_vm12, %vm362_vm11 }
  0xc1   :  { %v358_v33 = vsub.f32 1.0, %v357_v30  ;;  %v371_v34 = vmul.f32 %v241_v32, %v90_v27 }
  0xc3   :  { %v359_v37 = vmul.f32 %v578_v26, %v358_v33  ;;  %v373_v38 = vadd.f32 %v372_v35, %v371_v34 }
  0xc5   :  { %v464_v40 = vmul.f32 %v559_v36, %v373_v38  ;;  %579 = vtanh.f32 %v373_v38  ;;  %377 = vst.msk [vmem:[%s915_s16] sm:$0xff] %vm98_vm1, %v373_v38  ;;  %v360_v41 = vadd.f32 %v578_v26, %v359_v37 }
  0xc7   :  { %v465_v44 = vsel %vm98_vm1, %v464_v40, 0.0  ;;  %v364_v45 = vsel %vm363_vm13, %v578_v26, %v360_v41 }
  0xc8   :  { %466 = vadd.xlane.f32.xlu1 %v465_v44  ;;  %v369_v50 = vsel %vm366_vm14, %v368_v46, %v364_v45 }
  0xcb   :  { %v580_v49 = vpop.eup %579 }
  0xcc   :  { %v375_v51 = vmul.f32 %v580_v49, %v369_v50 }
  0xce   :  { %376 = vst.msk [vmem:[%s914_s15] sm:$0xff] %vm98_vm1, %v375_v51  ;;  %549 = vmatmul.msk.f32.vlgmr.msra.gmra.mxu3 %vm98_vm1, %v375_v51  ;;  %v455_v53 = vmul.f32 %v561_v48, %v375_v51 }
  0xd0   :  { %v456_v4 = vsel %vm98_vm1, %v455_v53, 0.0  ;;  %475 = vadd.xlane.f32.xlu1 %v474_v52 }
  0xd1   :  { %457 = vadd.xlane.f32.xlu0 %v456_v4 }
 0x13b   :  { %v467_v55 = vpop.xlane.xlu1 %466 }
 0x143   :  { %v476_v58 = vpop.xlane.xlu1 %475 }
 0x144   :  { %v458_v56 = vpop.xlane.xlu0 %457 }
 0x145   :  { %v459_v57 = vadd.f32 %v458_v56, %v450_v54 }
 0x147   :  { %v468_v60 = vadd.f32 %v467_v55, %v459_v57 }
 0x149   :  { %v477_v61 = vadd.f32 %v476_v58, %v468_v60 }
 0x14b   :  { %v482_v62 = vadd.f32 %v563_v59, %v477_v61 }
 0x14d   :  { %v550_v63 = vmul.f32 -1.442695, %v482_v62 }
 0x14f   :  { %581 = vpow2.f32 %v550_v63 }
 0x151   :  { %v434_v2 = vpop.f32.mrf.mxu3 }
 0x152   :  { %v435_v3 = vadd.f32 %v434_v2, %v411_v0 }
 0x154   :  { %v441_v5 = vadd.f32 %v564_v1, %v435_v3 }
 0x155   :  { %v582_v6 = vpop.eup %581 }
 0x156   :  { %v486_v7 = vadd.f32 1.0, %v582_v6  ;;  %442 = vst.msk [vmem:[%s916_s17] sm:$0xff] %vm98_vm1, %v441_v5 }
 0x158   :  { %583 = vrcp.f32 %v486_v7  ;;  %v498_v11 = vand.u32 2147483648, %v486_v7  ;;  %v496_v13 = vand.u32 2147483647, %v486_v7  ;;  %vm492_vm0 = vweird.f32 %v486_v7 }
 0x15a   :  { %v499_v15 = vor.u32 1.1754944e-38, %v498_v11  ;;  %vm497_vm4 = vcmp.eq.f32.partialorder %v496_v13, 8.507059e+37 }
 0x15e   :  { %v584_v8 = vpop.eup %583 }
 0x15f   :  { %v488_v9 = vmul.f32 %v584_v8, %v486_v7  ;;  %vm493_vm15 = vweird.f32 %v584_v8 }
 0x160   :  { %vm494_vm3 = vmor %vm492_vm0, %vm493_vm15 }
 0x161   :  { %v489_v10 = vsub.f32 1.0, %v488_v9 }
 0x163   :  { %v490_v12 = vmul.f32 %v584_v8, %v489_v10 }
 0x165   :  { %v491_v14 = vadd.f32 %v584_v8, %v490_v12 }
 0x167   :  { %v495_v16 = vsel %vm494_vm3, %v584_v8, %v491_v14 }
 0x168   :  { %v500_v17 = vsel %vm497_vm4, %v499_v15, %v495_v16 }
 0x169   :  { %503 = vst.msk [vmem:[%s917_s18] sm:$0xff] %vm502_vm2, %v500_v17 }
 0x16a   :  { %520 = vsyncpa [#allocation4], 1 }
 0x16b   :  { %521 = vsyncpa [#allocation6], 1 }

</bundles_post_ra>
